<compile_context>
chip_gen: v7x
topology: tpu7x:2x2x1
jax: 0.10.0
libtpu: 0.0.40
codegen_flags: <defaults>
</compile_context>

<pallas_src>
import functools

import jax
import jax.numpy as jnp
from jax.experimental import pallas as pl
from jax.experimental.pallas import tpu as pltpu


def _ce2d_kernel(logits_ref, target_ref, sum_ref, cnt_ref, row_ref, *,
                 hw, tn, tiles_per_split):
    """One (batch b, spatial split s, tile j) step.

    logits_ref: (1, C, TN)      -- channels on sublanes, pixels on lanes.
    target_ref: (1, 1, TN)      int32.
    sum_ref / cnt_ref: (1, 1, 1, TN) f32 output blocks, resident across the
                       innermost (arbitrary) axis; reduced in the wrapper.
    row_ref:    (C, TN) int32 VMEM scratch holding the channel-index iota,
                filled once per (b, s) under pl.when(j == 0).
    """
    s = pl.program_id(1)
    j = pl.program_id(2)

    @pl.when(j == 0)
    def _init():
        sum_ref[...] = jnp.zeros_like(sum_ref)
        cnt_ref[...] = jnp.zeros_like(cnt_ref)
        row_ref[...] = jax.lax.broadcasted_iota(jnp.int32, row_ref.shape, 0)

    x = logits_ref[0].astype(jnp.float32)            # (C, TN)
    t = target_ref[0]                                # (1, TN) int32

    # Global tile index (the spatial extent is split into `n_split` chunks of
    # `tiles_per_split` tiles each).  Columns beyond the true spatial extent
    # (ragged last tile / phantom clamped tiles) are invalid, as are ignored
    # pixels (target < 0).
    gt = s * tiles_per_split + j
    col = jax.lax.broadcasted_iota(jnp.int32, (1, tn), 1) + gt * tn
    valid = jnp.logical_and(t >= 0, col < hw)        # (1, TN)

    # log-softmax pieces along the channel (sublane) axis.  The full log-prob
    # tile is never materialized: per-column NLL = lse - (x_t - max).
    m = jnp.max(x, axis=0, keepdims=True)            # (1, TN)
    shifted = x - m                                  # (C, TN)
    lse = jnp.log(jnp.sum(jnp.exp(shifted), axis=0, keepdims=True))  # (1, TN)

    # One-hot gather of the target channel; masking is deferred to the
    # narrow (1, TN) result to save (C, TN) VPU ops.
    onehot = row_ref[...] == t                                        # (C, TN)
    picked = jnp.sum(jnp.where(onehot, shifted, 0.0), axis=0, keepdims=True)

    nll = lse - picked                                                # (1, TN)
    sum_ref[0, 0] = sum_ref[0, 0] + jnp.where(valid, nll, 0.0)
    cnt_ref[0, 0] = cnt_ref[0, 0] + valid.astype(jnp.float32)


def _pick_tile_cols(c, hw, itemsize, *, block_budget_bytes=2 << 20,
                    max_cols=64 * 1024):
    """Lane tile: as many pixels per block as fit ~2 MiB of input-dtype logits.

    Sized by the actual input itemsize (bf16 gets 2x the columns of f32).
    Multi-MiB blocks amortize the ~0.35 us per-grid-step overhead and keep
    the DMAs large enough to saturate HBM; the 2 MiB raw-block budget keeps
    double-buffered inputs + in-kernel f32 intermediates + the iota scratch
    comfortably inside a 32 MiB VMEM limit on every generation (incl. v7x).
    """
    cols = block_budget_bytes // (max(itemsize, 1) * max(c, 1))
    cols = max(128, min(max_cols, (cols // 128) * 128))
    # Either the full spatial extent (always a legal block) or a multiple of 128.
    return hw if hw <= cols else cols


def cross_entropy2d(logits_nchw, target_nhw, *, tile_cols=None,
                    spatial_splits=None):
    """logits_nchw: (n, c, h, w) float; target_nhw: (n, h, w) int (<0 = ignore)."""
    n, c, h, w = logits_nchw.shape
    hw = h * w

    # Free, contiguous reshapes -- no transpose / pad traffic in HBM.  Logits
    # dtype is passed through as-is (bf16 inputs stay bf16 in HBM; the cast to
    # f32 happens in-kernel).
    logits = logits_nchw.reshape(n, c, hw)
    target = target_nhw.astype(jnp.int32).reshape(n, 1, hw)

    itemsize = jnp.dtype(logits_nchw.dtype).itemsize
    tn = tile_cols if tile_cols is not None else _pick_tile_cols(c, hw, itemsize)

    total_tiles = pl.cdiv(hw, tn)
    if spatial_splits is None:
        # Split the spatial extent across two "parallel" chunks so both v7x
        # TensorCores stay busy even at batch 1 (harmless on v5e/v6e).
        spatial_splits = 2 if total_tiles >= 2 else 1
    n_split = spatial_splits
    tiles_per_split = pl.cdiv(total_tiles, n_split)
    last_block = total_tiles - 1

    def in_map(b, s, j):
        # Clamp phantom tiles (beyond the real spatial extent) to the last
        # real block; the kernel masks them out via the col < hw check.
        return (b, 0, jnp.minimum(s * tiles_per_split + j, last_block))

    def out_map(b, s, j):
        return (b, s, 0, 0)

    grid = (n, n_split, tiles_per_split)

    sum_out, cnt_out = pl.pallas_call(
        functools.partial(_ce2d_kernel, hw=hw, tn=tn,
                          tiles_per_split=tiles_per_split),
        out_shape=(
            jax.ShapeDtypeStruct((n, n_split, 1, tn), jnp.float32),
            jax.ShapeDtypeStruct((n, n_split, 1, tn), jnp.float32),
        ),
        grid_spec=pltpu.PrefetchScalarGridSpec(
            num_scalar_prefetch=0,
            grid=grid,
            in_specs=[
                pl.BlockSpec((1, c, tn), in_map),
                pl.BlockSpec((1, 1, tn), in_map),
            ],
            out_specs=[
                pl.BlockSpec((1, 1, 1, tn), out_map),
                pl.BlockSpec((1, 1, 1, tn), out_map),
            ],
            scratch_shapes=[pltpu.VMEM((c, tn), jnp.int32)],
        ),
        compiler_params=pltpu.CompilerParams(
            # Batch and spatial-split axes shard across TensorCores on v7x;
            # the tile axis carries per-(b, s) accumulation so it stays
            # "arbitrary".
            dimension_semantics=("parallel", "parallel", "arbitrary"),
            # Explicit limit: above v5e's 16 MiB scoped default, within v7x's
            # 64 MiB physical VMEM.
            vmem_limit_bytes=32 * 1024 * 1024,
        ),
    )(logits, target)

    # Single final cross-lane reduction + size_average divide (tiny XLA ops).
    # cnt == 0 (all pixels ignored) yields NaN, matching PyTorch semantics.
    # Note: targets with t >= C are counted as valid but contribute 0 to the
    # numerator (PyTorch would raise on such labels).
    return jnp.sum(sum_out) / jnp.sum(cnt_out)


def _reference(logits_nchw, target_nhw):
    n, c, h, w = logits_nchw.shape
    logp = jax.nn.log_softmax(logits_nchw.astype(jnp.float32), axis=1)
    logp = jnp.transpose(logp, (0, 2, 3, 1)).reshape(-1, c)
    t = target_nhw.reshape(-1)
    valid = t >= 0
    t_safe = jnp.where(valid, t, 0)
    picked = jnp.take_along_axis(logp, t_safe[:, None], axis=1)[:, 0]
    loss_sum = -jnp.sum(jnp.where(valid, picked, 0.0))
    return loss_sum / jnp.sum(valid.astype(jnp.float32))


if __name__ == "__main__":
    key = jax.random.PRNGKey(0)
    k1, k2, k3, k4 = jax.random.split(key, 4)

    # Case 1: small shapes matching the module spec (single full-extent tile).
    n, c, h, w = 2, 4, 16, 16
    logits = jax.random.normal(k1, (n, c, h, w), dtype=jnp.float32)
    # Labels in [-1, c): -1 marks ignored pixels (exercises the >= 0 mask).
    target = jax.random.randint(k2, (n, h, w), -1, c, dtype=jnp.int32)

    loss = cross_entropy2d(logits, target)
    jax.block_until_ready(loss)
    ref = _reference(logits, target)
    assert jnp.allclose(loss, ref, rtol=1e-5, atol=1e-5), (loss, ref)

    # Case 2: force multiple tiles + spatial split + ragged/phantom last tile
    # (hw = 300, tile_cols = 128 -> 3 real tiles, 2 splits of 2 tiles each).
    n2, c2, h2, w2 = 2, 4, 15, 20
    logits2 = jax.random.normal(k3, (n2, c2, h2, w2), dtype=jnp.float32)
    target2 = jax.random.randint(k4, (n2, h2, w2), -1, c2, dtype=jnp.int32)

    loss2 = cross_entropy2d(logits2, target2, tile_cols=128)
    jax.block_until_ready(loss2)
    ref2 = _reference(logits2, target2)
    assert jnp.allclose(loss2, ref2, rtol=1e-5, atol=1e-5), (loss2, ref2)

    print("KERNEL_OK")
</pallas_src>

<mosaic_0001>
module attributes {stable_mosaic.version = 11 : i64} {
  func.func @_ce2d_kernel(%arg0: i32, %arg1: i32, %arg2: i32, %arg3: memref<1x4x256xf32, #tpu.memory_space<vmem>>, %arg4: memref<1x1x256xi32, #tpu.memory_space<vmem>>, %arg5: memref<1x1x1x256xf32, #tpu.memory_space<vmem>>, %arg6: memref<1x1x1x256xf32, #tpu.memory_space<vmem>>, %arg7: memref<4x256xi32, #tpu.memory_space<vmem>>) attributes {dimension_semantics = [#tpu.dimension_semantics<parallel>, #tpu.dimension_semantics<parallel>, #tpu.dimension_semantics<arbitrary>], iteration_bounds = array<i64: 2, 1, 1>, scalar_prefetch = 0 : i64, scratch_operands = 1 : i64, tpu.core_type = #tpu.core_type<tc>, window_params = [{transform_indices = @transform_0, window_bounds = array<i64: 1, 4, 256>}, {transform_indices = @transform_1, window_bounds = array<i64: 1, 1, 256>}, {transform_indices = @transform_2, window_bounds = array<i64: 1, 1, 1, 256>}, {transform_indices = @transform_3, window_bounds = array<i64: 1, 1, 1, 256>}]} {
    %c0_i32 = arith.constant 0 : i32
    %0 = arith.cmpi eq, %arg2, %c0_i32 : i32
    %1 = arith.extui %0 : i1 to i32
    %c0_i32_0 = arith.constant 0 : i32
    %2 = arith.cmpi ne, %1, %c0_i32_0 : i32
    scf.if %2 {
      %cst_30 = arith.constant 0.000000e+00 : f32
      %50 = vector.broadcast %cst_30 : f32 to vector<1x1x1x256xf32>
      %c0_31 = arith.constant 0 : index
      %c0_32 = arith.constant 0 : index
      %c0_33 = arith.constant 0 : index
      %c0_34 = arith.constant 0 : index
      %51 = vector.load %arg5[%c0_31, %c0_32, %c0_33, %c0_34] : memref<1x1x1x256xf32, #tpu.memory_space<vmem>>, vector<1x1x1x256xf32>
      tpu.vector_store %arg5[%c0_31, %c0_32, %c0_33, %c0_34], %50 {strides = array<i32>} : memref<1x1x1x256xf32, #tpu.memory_space<vmem>>, vector<1x1x1x256xf32>,
      %cst_35 = arith.constant 0.000000e+00 : f32
      %52 = vector.broadcast %cst_35 : f32 to vector<1x1x1x256xf32>
      %c0_36 = arith.constant 0 : index
      %c0_37 = arith.constant 0 : index
      %c0_38 = arith.constant 0 : index
      %c0_39 = arith.constant 0 : index
      %53 = vector.load %arg6[%c0_36, %c0_37, %c0_38, %c0_39] : memref<1x1x1x256xf32, #tpu.memory_space<vmem>>, vector<1x1x1x256xf32>
      tpu.vector_store %arg6[%c0_36, %c0_37, %c0_38, %c0_39], %52 {strides = array<i32>} : memref<1x1x1x256xf32, #tpu.memory_space<vmem>>, vector<1x1x1x256xf32>,
      %54 = tpu.iota {dimensions = array<i32: 0>} : vector<4x256xi32>
      %c0_40 = arith.constant 0 : index
      %c0_41 = arith.constant 0 : index
      %55 = vector.load %arg7[%c0_40, %c0_41] : memref<4x256xi32, #tpu.memory_space<vmem>>, vector<4x256xi32>
      tpu.vector_store %arg7[%c0_40, %c0_41], %54 {strides = array<i32>} : memref<4x256xi32, #tpu.memory_space<vmem>>, vector<4x256xi32>,
    } else {
    }
    %c0 = arith.constant 0 : index
    %c0_1 = arith.constant 0 : index
    %c0_2 = arith.constant 0 : index
    %3 = vector.load %arg3[%c0, %c0_1, %c0_2] : memref<1x4x256xf32, #tpu.memory_space<vmem>>, vector<1x4x256xf32>
    %4 = vector.shape_cast %3 : vector<1x4x256xf32> to vector<4x256xf32>
    %c0_3 = arith.constant 0 : index
    %c0_4 = arith.constant 0 : index
    %c0_5 = arith.constant 0 : index
    %5 = vector.load %arg4[%c0_3, %c0_4, %c0_5] : memref<1x1x256xi32, #tpu.memory_space<vmem>>, vector<1x1x256xi32>
    %6 = vector.shape_cast %5 : vector<1x1x256xi32> to vector<1x256xi32>
    %c1_i32 = arith.constant 1 : i32
    %7 = arith.muli %arg1, %c1_i32 : i32
    %8 = arith.addi %7, %arg2 : i32
    %9 = tpu.iota {dimensions = array<i32: 1>} : vector<1x256xi32>
    %c256_i32 = arith.constant 256 : i32
    %10 = arith.muli %8, %c256_i32 : i32
    %11 = vector.broadcast %10 : i32 to vector<1x256xi32>
    %12 = arith.addi %9, %11 : vector<1x256xi32>
    %c0_i32_6 = arith.constant 0 : i32
    %13 = vector.broadcast %c0_i32_6 : i32 to vector<1x256xi32>
    %14 = arith.cmpi sge, %6, %13 : vector<1x256xi32>
    %c256_i32_7 = arith.constant 256 : i32
    %15 = vector.broadcast %c256_i32_7 : i32 to vector<1x256xi32>
    %16 = arith.cmpi slt, %12, %15 : vector<1x256xi32>
    %17 = arith.andi %14, %16 : vector<1x256xi1>
    %cst = arith.constant dense<0xFF800000> : vector<256xf32>
    %18 = vector.multi_reduction <maximumf>, %4, %cst [0] : vector<4x256xf32> to vector<256xf32>
    %19 = vector.shape_cast %18 : vector<256xf32> to vector<1x256xf32>
    %20 = vector.broadcast %19 : vector<1x256xf32> to vector<4x256xf32>
    %21 = arith.subf %4, %20 : vector<4x256xf32>
    %22 = math.exp %21 : vector<4x256xf32>
    %cst_8 = arith.constant dense<0.000000e+00> : vector<256xf32>
    %23 = vector.multi_reduction <add>, %22, %cst_8 [0] : vector<4x256xf32> to vector<256xf32>
    %24 = vector.shape_cast %23 : vector<256xf32> to vector<1x256xf32>
    %25 = math.log %24 : vector<1x256xf32>
    %c0_9 = arith.constant 0 : index
    %c0_10 = arith.constant 0 : index
    %26 = vector.load %arg7[%c0_9, %c0_10] : memref<4x256xi32, #tpu.memory_space<vmem>>, vector<4x256xi32>
    %27 = vector.broadcast %6 : vector<1x256xi32> to vector<4x256xi32>
    %28 = arith.cmpi eq, %26, %27 : vector<4x256xi32>
    %cst_11 = arith.constant 0.000000e+00 : f32
    %29 = vector.broadcast %cst_11 : f32 to vector<4x256xf32>
    %30 = arith.select %28, %21, %29 : vector<4x256xi1>, vector<4x256xf32>
    %cst_12 = arith.constant dense<0.000000e+00> : vector<256xf32>
    %31 = vector.multi_reduction <add>, %30, %cst_12 [0] : vector<4x256xf32> to vector<256xf32>
    %32 = vector.shape_cast %31 : vector<256xf32> to vector<1x256xf32>
    %33 = arith.subf %25, %32 : vector<1x256xf32>
    %c0_13 = arith.constant 0 : index
    %c0_14 = arith.constant 0 : index
    %c0_15 = arith.constant 0 : index
    %c0_16 = arith.constant 0 : index
    %34 = vector.load %arg5[%c0_13, %c0_14, %c0_15, %c0_16] : memref<1x1x1x256xf32, #tpu.memory_space<vmem>>, vector<1x1x1x256xf32>
    %35 = vector.shape_cast %34 : vector<1x1x1x256xf32> to vector<1x256xf32>
    %cst_17 = arith.constant 0.000000e+00 : f32
    %36 = vector.broadcast %cst_17 : f32 to vector<1x256xf32>
    %37 = arith.select %17, %33, %36 : vector<1x256xi1>, vector<1x256xf32>
    %38 = arith.addf %35, %37 : vector<1x256xf32>
    %c0_18 = arith.constant 0 : index
    %c0_19 = arith.constant 0 : index
    %c0_20 = arith.constant 0 : index
    %c0_21 = arith.constant 0 : index
    %39 = vector.load %arg5[%c0_18, %c0_19, %c0_20, %c0_21] : memref<1x1x1x256xf32, #tpu.memory_space<vmem>>, vector<1x1x1x256xf32>
    %40 = vector.shape_cast %39 : vector<1x1x1x256xf32> to vector<1x256xf32>
    %41 = vector.shape_cast %38 : vector<1x256xf32> to vector<1x1x1x256xf32>
    tpu.vector_store %arg5[%c0_18, %c0_19, %c0_20, %c0_21], %41 {strides = array<i32>} : memref<1x1x1x256xf32, #tpu.memory_space<vmem>>, vector<1x1x1x256xf32>,
    %c0_22 = arith.constant 0 : index
    %c0_23 = arith.constant 0 : index
    %c0_24 = arith.constant 0 : index
    %c0_25 = arith.constant 0 : index
    %42 = vector.load %arg6[%c0_22, %c0_23, %c0_24, %c0_25] : memref<1x1x1x256xf32, #tpu.memory_space<vmem>>, vector<1x1x1x256xf32>
    %43 = vector.shape_cast %42 : vector<1x1x1x256xf32> to vector<1x256xf32>
    %44 = arith.extui %17 : vector<1x256xi1> to vector<1x256xi32>
    %45 = arith.sitofp %44 : vector<1x256xi32> to vector<1x256xf32>
    %46 = arith.addf %43, %45 : vector<1x256xf32>
    %c0_26 = arith.constant 0 : index
    %c0_27 = arith.constant 0 : index
    %c0_28 = arith.constant 0 : index
    %c0_29 = arith.constant 0 : index
    %47 = vector.load %arg6[%c0_26, %c0_27, %c0_28, %c0_29] : memref<1x1x1x256xf32, #tpu.memory_space<vmem>>, vector<1x1x1x256xf32>
    %48 = vector.shape_cast %47 : vector<1x1x1x256xf32> to vector<1x256xf32>
    %49 = vector.shape_cast %46 : vector<1x256xf32> to vector<1x1x1x256xf32>
    tpu.vector_store %arg6[%c0_26, %c0_27, %c0_28, %c0_29], %49 {strides = array<i32>} : memref<1x1x1x256xf32, #tpu.memory_space<vmem>>, vector<1x1x1x256xf32>,
    return
  }
  func.func @transform_0(%arg0: i32, %arg1: i32, %arg2: i32) -> (i32, i32, i32) {
    %c1_i32 = arith.constant 1 : i32
    %0 = arith.muli %arg1, %c1_i32 : i32
    %1 = arith.addi %0, %arg2 : i32
    %c0_i32 = arith.constant 0 : i32
    %2 = arith.minsi %1, %c0_i32 : i32
    %c0_i32_0 = arith.constant 0 : i32
    %c0_i32_1 = arith.constant 0 : i32
    return %arg0, %c0_i32_0, %2 : i32, i32, i32
  }
  func.func @transform_1(%arg0: i32, %arg1: i32, %arg2: i32) -> (i32, i32, i32) {
    %c1_i32 = arith.constant 1 : i32
    %0 = arith.muli %arg1, %c1_i32 : i32
    %1 = arith.addi %0, %arg2 : i32
    %c0_i32 = arith.constant 0 : i32
    %2 = arith.minsi %1, %c0_i32 : i32
    %c0_i32_0 = arith.constant 0 : i32
    %c0_i32_1 = arith.constant 0 : i32
    return %arg0, %c0_i32_0, %2 : i32, i32, i32
  }
  func.func @transform_2(%arg0: i32, %arg1: i32, %arg2: i32) -> (i32, i32, i32, i32) {
    %c0_i32 = arith.constant 0 : i32
    %c0_i32_0 = arith.constant 0 : i32
    %c0_i32_1 = arith.constant 0 : i32
    return %arg0, %arg1, %c0_i32, %c0_i32_0 : i32, i32, i32, i32
  }
  func.func @transform_3(%arg0: i32, %arg1: i32, %arg2: i32) -> (i32, i32, i32, i32) {
    %c0_i32 = arith.constant 0 : i32
    %c0_i32_0 = arith.constant 0 : i32
    %c0_i32_1 = arith.constant 0 : i32
    return %arg0, %arg1, %c0_i32, %c0_i32_0 : i32, i32, i32, i32
  }
}

</mosaic_0001>

<bundles_post_ra>
// kernel: tpu_custom_call.1
= control target key start
LH: loop header
LB: loop body
LE: loop exit
PB: predicated region body
PF: predicated region fallthrough
CT: control target
= control target key end

     0   :  { %9 = vsyncpa [#allocation4], 0  ;;  %s1263_s0 = inlined_call_operand.hbm [shape: f32[2,4,256], index: 0, kind: input, shape index: {}]   ;;  %s1264_s1 = inlined_call_operand.hbm [shape: s32[2,1,256], index: 1, kind: input, shape index: {}]   ;;  %s1265_s2 = inlined_call_operand.hbm [shape: f32[2,1,1,256], index: 2, kind: output, shape index: {0}]   ;;  %s1266_s3 = inlined_call_operand.hbm [shape: f32[2,1,1,256], index: 3, kind: output, shape index: {1}]  }
   0x1   :  { %11 = vsyncpa [#allocation4 + $0x1], 0 }
   0x2   :  { %12 = vsyncpa [#allocation7], 0 }
   0x3   :  { %14 = vsyncpa [#allocation7 + $0x1], 0 }
   0x4   :  { %15 = vsyncpa [#allocation5], 0 }
   0x5   :  { %17 = vsyncpa [#allocation5 + $0x1], 0 }
   0x6   :  { %18 = vsyncpa [#allocation10], 0 }
   0x7   :  { %20 = vsyncpa [#allocation10 + $0x1], 0  ;;  %s958_s12 = smov 0   ;;  %s960_s13 = smov 0  }
   0x8   :  { %s962_s14 = smov 0   ;;  %s964_s15 = smov 0  }
   0x9   :  { %s966_s16 = smov 0   ;;  %s968_s17 = smov 0  }
   0xa LB: > { %s639_s18 = sadd.s32 4294967295, %s928_s17   ;;  %s640_s19 = sadd.s32 4294967294, %s928_s17   ;;  %s928_s17 = sphi %s968_s17, %s26_s17   ;;  %s924_s16 = sphi %s966_s16, %s1290_s16   ;;  %s920_s15 = sphi %s964_s15, %s1289_s15   ;;  %s916_s14 = sphi %s962_s14, %s1288_s14   ;;  %s912_s13 = sphi %s960_s13, %s1287_s13   ;;  %s908_s12 = sphi %s958_s12, %s1286_s12  }
   0xb   : > { %s45_s20 = sadd.s32 1, %s924_s16  ;;  %s60_s21 = sadd.s32 1, %s916_s14 }
   0xc   : > { %p47_p0 = scmp.ge.s32.totalorder %s45_s20, 2  ;;  %p67_p1 = scmp.ne.s32.totalorder %s916_s14, %s912_s13 }
   0xd   : > { %p68_p2 = scmp.eq.s32.totalorder %s928_s17, 0  ;;  %p73_p3 = scmp.ne.s32.totalorder %s912_s13, %s908_s12 }
   0xe   : > { %s1292_s20 = smov (%p47_p0, %s45_s20), 0  ;;  %p74_p5 = scmp.eq.s32.totalorder %s639_s18, 0 }
   0xf   : > { %p999_p4 = por %p68_p2, %p67_p1  ;;  %s55_s23 = ssub.s32 %s924_s16, %s1292_s20 }
  0x10   : > { %p133_p6 = scmp.eq.s32.totalorder %s639_s18, 1  ;;  %p58_p7 = scmp.eq.s32.totalorder %s55_s23, 0 }
  0x11   : > { %p1005_p8 = por %p74_p5, %p73_p3  ;;  %p139_p10 = scmp.eq.s32.totalorder %s640_s19, 1 }
  0x12   : > { %p1009_p9 = por %p133_p6, %p67_p1  ;;  %p689_p13 = scmp.lt.s32.totalorder %s928_s17, 2 }
  0x13   : > { %s1270_s24 = scalar_select %p1005_p8, 1, 0 }
  0x14   : > { %s1271_s25 = scalar_select %p1009_p9, 1, 0 }
  0x15   : > { %s1014_s26 = scalar_select %p58_p7, %s916_s14, %s60_s21  }
  0x16   : > { %p1016_p11 = por %p139_p10, %p73_p3  ;;  %s1023_s28 = sand.u32 1, %s916_s14  }
  0x17   : > { %s643_s29 = sshll.u32 %s1023_s28, 3  ;;  %s663_s30 = sshll.u32 %s924_s16, 7 }
  0x18   : > { %s1272_s27 = scalar_select %p1016_p11, 1, 0 }
  0x19   : > { %s1030_s6 = scalar_lea.hbm %s1263_s0, %s663_s30  ;;  %s191_s7 = scalar_lea.vmem [#allocation3], %s643_s29 }
  0x1a   : > { %s204_s8 = sshll.u32 %s191_s7, 4  ;;  %p1036_p0 = pnand %p689_p13, %p999_p4  ;;  %s1032_s8 = int_to_ptr.vmem [resolvable:$true] %s204_s8 }
  0x1b   : > { %s188_s10 = scalar_lea.sflag [#allocation4], %s1023_s28  ;;  %s750_s11 = scalar_lea.hbm %s1030_s6, 128 }
  0x1c   : > { %p751_p3 = scmp.ne.s32.totalorder %s1030_s6, %s750_s11  ;;  %p752_p5 = pneg %p1036_p0 }
  0x1d   : > { %s755_s21 = scalar_lea.hbm %s1263_s0, 256  ;;  %p756_p4 = scmp.lt.u32.totalorder %s1030_s6, %s1263_s0 }
  0x1e   : > { %p753_p6 = pnand %p752_p5, %p751_p3  ;;  %p757_p10 = scmp.lt.u32.totalorder %s755_s21, %s750_s11 }
  0x1f   : > { %p759_p12 = scmp.lt.u32.totalorder %s750_s11, %s1030_s6 }
  0x20   : > { %p754_p7 = pneg %p753_p6  ;;  %p758_p13 = por %p757_p10, %p756_p4 }
  0x22   : > { %p760_p1 = por %p759_p12, %p758_p13 }
  0x24   : > { %p761_p2 = pnand %p760_p1, %p754_p7 }
  0x26   : > { %764 = shalt.err (!%p761_p2)
}
  0x27   : > { %s765_s29 = scalar_lea.vmem %s1032_s8, 128  ;;  %s930_s30 = smov [#allocation3]  }
  0x28   : > { %p766_p3 = scmp.ne.s32.totalorder %s1032_s8, %s765_s29  ;;  %s770_s4 = sshll.u32 %s930_s30, 4  ;;  %s771_s4 = int_to_ptr.vmem [resolvable:$false] %s770_s4 }
  0x29   : > { %s772_s5 = scalar_lea.vmem %s771_s4, 256  ;;  %p773_p9 = scmp.lt.s32.totalorder %s1032_s8, %s771_s4 }
  0x2a   : > { %p768_p6 = pnand %p766_p3, %p752_p5  ;;  %p774_p4 = scmp.lt.s32.totalorder %s772_s5, %s765_s29 }
  0x2c   : > { %p769_p11 = pneg %p768_p6  ;;  %p775_p10 = por %p774_p4, %p773_p9 }
  0x2e   : > { %p776_p12 = pnand %p775_p10, %p769_p11 }
  0x30   : > { %779 = shalt.err (!%p776_p12)
}
  0x31   : > { %678 = dma.hbm_to_vmem [thread:$0]  (!%p1036_p0), %s1030_s6, 128, %s1032_s8, %s188_s10  }
  0x32   : > { %p1274_p1 = scmp.lt.s32.totalorder %s928_s17, 3  ;;  %p1275_p2 = scmp.ge.s32.totalorder %s928_s17, 1 }
  0x33   : > { %s646_s11 = sshll.u32 %s1023_s28, 1  ;;  %s664_s18 = sshll.u32 %s924_s16, 5 }
  0x34   : > { %p1072_p7 = pnand %p1275_p2, %p1274_p1  ;;  %s1081_s22 = scalar_lea.hbm %s1264_s1, %s664_s18 }
  0x35   : > { %s215_s23 = scalar_lea.vmem [#allocation6], %s646_s11  ;;  %s212_s6 = scalar_lea.sflag [#allocation7], %s1023_s28 }
  0x36   : > { %s1276_s7 = scalar_select %p1072_p7, 1, 0 }
  0x37   : > { %s228_s29 = sshll.u32 %s215_s23, 4  ;;  %s780_s8 = scalar_lea.hbm %s1081_s22, 32  ;;  %s229_s29 = int_to_ptr.vmem [resolvable:$true] %s228_s29 }
  0x38   : > { %p781_p9 = scmp.ne.s32.totalorder %s1081_s22, %s780_s8  ;;  %s785_s4 = scalar_lea.hbm %s1264_s1, 64 }
  0x39   : > { %p786_p3 = scmp.lt.u32.totalorder %s1081_s22, %s1264_s1  ;;  %p787_p6 = scmp.lt.u32.totalorder %s785_s4, %s780_s8 }
  0x3a   : > { %p783_p11 = pnand %p781_p9, %p752_p5  ;;  %p789_p10 = scmp.lt.u32.totalorder %s780_s8, %s1081_s22 }
  0x3b   : > { %p788_p4 = por %p787_p6, %p786_p3 }
  0x3c   : > { %p784_p13 = pneg %p783_p11 }
  0x3d   : > { %p790_p12 = por %p789_p10, %p788_p4 }
  0x3f   : > { %p791_p1 = pnand %p790_p12, %p784_p13 }
  0x41   : > { %794 = shalt.err (!%p791_p1)
}
  0x42   : > { %s795_s28 = scalar_lea.vmem %s229_s29, 32  ;;  %s931_s11 = smov [#allocation6]  }
  0x43   : > { %p796_p2 = scmp.ne.s32.totalorder %s229_s29, %s795_s28  ;;  %s800_s19 = sshll.u32 %s931_s11, 4  ;;  %s801_s19 = int_to_ptr.vmem [resolvable:$false] %s800_s19 }
  0x44   : > { %s802_s21 = scalar_lea.vmem %s801_s19, 64  ;;  %p803_p8 = scmp.lt.s32.totalorder %s229_s29, %s801_s19 }
  0x45   : > { %p798_p9 = pnand %p796_p2, %p752_p5  ;;  %p804_p7 = scmp.lt.s32.totalorder %s802_s21, %s795_s28 }
  0x47   : > { %p799_p11 = pneg %p798_p9  ;;  %p805_p3 = por %p804_p7, %p803_p8 }
  0x49   : > { %p806_p6 = pnand %p805_p3, %p799_p11 }
  0x4b   : > { %809 = shalt.err (!%p806_p6)
}
  0x4c   : > { %681 = dma.hbm_to_vmem [thread:$0]  (!%p1036_p0), %s1081_s22, 32, %s229_s29, %s212_s6  }
  0x4d   : > { %p1277_p13 = scmp.ne.s32.totalorder %s1276_s7, 0 }
  0x4e   : > { %s1106_s23 = sand.u32 (!%p1277_p13), 1, %s912_s13   ;;  %p1278_p5 = scmp.ne.s32.totalorder (!%p1277_p13), %s1270_s24, 0 }
  0x4f   : > { %237 = sbr.rel (%p1277_p13) target bundleno = 193 (0xc1), region = 28  ;;  %s650_s8 = sshll.u32 (!%p1277_p13), %s1106_s23, 3 }
  0x50   : > { %s240_s10 = scalar_lea.sflag (!%p1277_p13), [#allocation4], %s1106_s23  ;;  %s243_s30 = scalar_lea.vmem (!%p1277_p13), [#allocation3], %s650_s8 }
  0x56   : > { %891 = dma.done.wait (%p1278_p5), %s240_s10, 128  }
  0x57   : > { %893 = vsyncadd (%p1278_p5), %s240_s10, 4294967168  ;;  %s651_s9 = sshll.u32 %s1106_s23, 1  ;;  %s249_s7 = scalar_lea.sflag [#allocation7], %s1106_s23 }
  0x58   : > { %s252_s22 = scalar_lea.vmem [#allocation6], %s651_s9 }
  0x59   : > { %895 = dma.done.wait (%p1278_p5), %s249_s7, 32  }
  0x5a   : > { %897 = vsyncadd (%p1278_p5), %s249_s7, 4294967264  ;;  %v297_v0 = vlaneseq  ;;  %v932_v2 = vmov 1966171168   ;;  %s1124_s29 = scalar_lea.vmem [#allocation8], %s651_s9  ;;  %v933_v4 = vmov 0.0   ;;  %s1129_s6 = scalar_lea.vmem [#allocation9], %s651_s9 }
  0x5b   : > { %v330_v3 = vunpack.c.l.s4 %v932_v2  ;;  %v934_v6 = vmov 1   ;;  %vm348_vm1 = vcmask 1043456   ;;  %v1139_v10 = vld [vmem:[%s243_s30] sm:$0xff]  ;;  %v314_v14 = vld [vmem:[%s252_s22] sm:$0x3]  ;;  %s665_s24 = sshll.u32 %s920_s15, 5 }
  0x5c   : > { %vm1120_vm0 = vcmp.lt.s32.totalorder %v297_v0, 256  ;;  %v1134_v5 = vshrl.u32 %v297_v0, 7  ;;  %v328_v7 = vcombine.low %v934_v6, %v934_v6  ;;  %v346_v12 = vcombine.high %v1139_v10, %v1139_v10  ;;  %s491_s4 = sshll.u32 %s1129_s6, 4  ;;  %s1162_s28 = scalar_lea.hbm %s1266_s3, %s665_s24  ;;  %s1164_s4 = int_to_ptr.vmem [resolvable:$true] %s491_s4 }
  0x5d   : > { %301 = vst.msk [vmem:[%s1124_s29] sm:$0x3] %vm1120_vm0, %v933_v4  ;;  %302 = vst.msk [vmem:[%s1129_s6] sm:$0x3] %vm1120_vm0, %v933_v4  ;;  %v331_v8 = vunpack.c.0.s8 %v330_v3  ;;  %v349_v13 = vsel %vm348_vm1, %v1139_v10, -inf  ;;  %vm323_vm2 = vcmp.ge.s32.totalorder %v314_v14, 0 }
  0x5e   : > { %v350_v15 = vrot.slane %v349_v13, 4  ;;  %v356_v17 = vsel %vm348_vm1, %v346_v12, -inf  ;;  %v935_v24 = vmov 839922192   ;;  %s459_s11 = scalar_lea.sflag [#allocation10], %s1106_s23  ;;  %s810_s19 = scalar_lea.vmem %s1164_s4, 32 }
  0x5f   : > { %v1137_v9 = vsub.s32 %v331_v8, %v1134_v5  ;;  %v357_v19 = vrot.slane %v356_v17, 4  ;;  %v306_v25 = vunpack.c.l.s4 %v935_v24  ;;  %p811_p8 = scmp.ne.s32.totalorder %s1164_s4, %s810_s19  ;;  %p1283_p0 = scmp.ne.s32.totalorder %s1271_s25, 0 }
  0x60   : > { %v351_v18 = vmax.f32 %v349_v13, %v350_v15  ;;  %s936_s21 = smov [#allocation9]  }
  0x61   : > { %v335_v11 = vrot.slane %v328_v7, %v1137_v9  ;;  %v358_v23 = vmax.f32 %v356_v17, %v357_v19  ;;  %v307_v32 = vunpack.c.0.s8 %v306_v25  ;;  %p812_p7 = pnand %p811_p8, %p1283_p0  ;;  %s814_s8 = sshll.u32 %s936_s21, 4  ;;  %s815_s8 = int_to_ptr.vmem [resolvable:$false] %s814_s8 }
  0x62   : > { %v352_v22 = vrot.slane %v351_v18, 2  ;;  %s816_s10 = scalar_lea.vmem %s815_s8, 64  ;;  %p817_p10 = scmp.lt.s32.totalorder %s1164_s4, %s815_s8 }
  0x63   : > { %v342_v16 = vrot.slane %v335_v11, %v1137_v9  ;;  %v359_v28 = vrot.slane %v358_v23, 2  ;;  %p813_p4 = pneg %p812_p7  ;;  %p818_p12 = scmp.lt.s32.totalorder %s816_s10, %s810_s19 }
  0x64   : > { %v448_v20 = vld [vmem:[%s1129_s6] sm:$0x3]  ;;  %v353_v27 = vmax.f32 %v351_v18, %v352_v22 }
  0x65   : > { %vm343_vm3 = vcmp.ne.s32.totalorder %v342_v16, 0  ;;  %v360_v31 = vmax.f32 %v358_v23, %v359_v28  ;;  %p819_p1 = por %p818_p12, %p817_p10 }
  0x66   : > { %vm1151_vm4 = vmand %vm323_vm2, %vm343_vm3  ;;  %v354_v30 = vrot.slane %v353_v27, 1 }
  0x67   : > { %v654_v26 = vsel %vm1151_vm4, 1.0, %v933_v4  ;;  %p820_p2 = pnand %p819_p1, %p813_p4 }
  0x68   : > { %v451_v29 = vadd.f32 %v654_v26, %v448_v20 }
  0x6a   : > { %452 = vst.msk [vmem:[%s1129_s6] sm:$0x3] %vm1120_vm0, %v451_v29 }
  0x6b   : > { %823 = shalt.err (!%p820_p2)
}
  0x6c   : > { %s824_s30 = scalar_lea.hbm %s1162_s28, 32  ;;  %s828_s22 = scalar_lea.hbm %s1266_s3, 64 }
  0x6d   : > { %p825_p9 = scmp.ne.s32.totalorder %s1162_s28, %s824_s30  ;;  %p829_p6 = scmp.lt.u32.totalorder %s1162_s28, %s1266_s3 }
  0x6e   : > { %p830_p13 = scmp.lt.u32.totalorder %s828_s22, %s824_s30  ;;  %p832_p8 = scmp.lt.u32.totalorder %s824_s30, %s1162_s28 }
  0x6f   : > { %p826_p11 = pnand %p825_p9, %p1283_p0 }
  0x70   : > { %p831_p5 = por %p830_p13, %p829_p6 }
  0x71   : > { %p827_p3 = pneg %p826_p11 }
  0x72   : > { %p833_p7 = por %p832_p8, %p831_p5 }
  0x74   : > { %p834_p4 = pnand %p833_p7, %p827_p3 }
  0x76   : > { %837 = shalt.err (!%p834_p4)
}
  0x77   : > { %672 = dma.vmem_to_hbm [thread:$0]  (%p1283_p0), %s1164_s4, 32, %s1162_s28, %s459_s11   ;;  %v355_v33 = vmax.f32 %v353_v27, %v354_v30  ;;  %v361_v34 = vrot.slane %v360_v31, 1  ;;  %v394_v35 = vsub.s32 0, %v1134_v5  ;;  %v398_v36 = vsub.s32 1, %v1134_v5  ;;  %v422_v25 = vld [vmem:[%s1124_s29] sm:$0x3] }
  0x78   : > { %v310_v38 = vsub.s32 %v307_v32, %v1134_v5  ;;  %s475_s4 = sshll.u32 %s1124_s29, 4  ;;  %s1211_s11 = scalar_lea.hbm %s1265_s2, %s665_s24  ;;  %s1213_s4 = int_to_ptr.vmem [resolvable:$true] %s475_s4 }
  0x79   : > { %v362_v37 = vmax.f32 %v360_v31, %v361_v34  ;;  %v395_v40 = vrot.slane %v314_v14, %v394_v35  ;;  %v399_v41 = vrot.slane %v314_v14, %v398_v36  ;;  %s454_s19 = scalar_lea.sflag [#allocation5], %s1106_s23  ;;  %s838_s21 = scalar_lea.vmem %s1213_s4, 32 }
  0x7a   : > { %v311_v43 = vrot.slane %v1134_v5, %v310_v38  ;;  %p839_p10 = scmp.ne.s32.totalorder %s1213_s4, %s838_s21  ;;  %s937_s15 = smov [#allocation8]  }
  0x7b   : > { %v365_v39 = vcombine.low %v355_v33, %v362_v37  ;;  %v400_v45 = vcombine.low %v395_v40, %v399_v41  ;;  %s842_s8 = sshll.u32 %s937_s15, 4  ;;  %s843_s8 = int_to_ptr.vmem [resolvable:$false] %s842_s8 }
  0x7c   : > { %p840_p12 = pnand %p839_p10, %p1283_p0  ;;  %s844_s10 = scalar_lea.vmem %s843_s8, 64 }
  0x7d   : > { %v367_v42 = vsub.f32 %v1139_v10, %v365_v39  ;;  %vm401_vm5 = vcmp.eq.s32.totalorder %v311_v43, %v400_v45  ;;  %p845_p2 = scmp.lt.s32.totalorder %s1213_s4, %s843_s8  ;;  %p846_p9 = scmp.lt.s32.totalorder %s844_s10, %s838_s21 }
  0x7e   : > { %p841_p1 = pneg %p840_p12 }
  0x7f   : > { %v368_v44 = vmul.f32 1.442695, %v367_v42  ;;  %v402_v46 = vsel %vm401_vm5, %v367_v42, 0.0  ;;  %p847_p11 = por %p846_p9, %p845_p2 }
  0x80   : > { %v404_v47 = vcombine.high %v402_v46, %v402_v46  ;;  %v406_v49 = vsel %vm348_vm1, %v402_v46, 0.0 }
  0x81   : > { %744 = vpow2.f32 %v368_v44  ;;  %v407_v55 = vrot.slane %v406_v49, 4  ;;  %p848_p3 = pnand %p847_p11, %p841_p1 }
  0x82   : > { %v413_v53 = vsel %vm348_vm1, %v404_v47, 0.0 }
  0x83   : > { %v414_v58 = vrot.slane %v413_v53, 4  ;;  %v408_v61 = vadd.f32 %v407_v55, %v406_v49 }
  0x85   : > { %v415_v0 = vadd.f32 %v414_v58, %v413_v53  ;;  %v409_v4 = vrot.slane %v408_v61, 2 }
  0x87   : > { %v416_v7 = vrot.slane %v415_v0, 2  ;;  %v410_v10 = vadd.f32 %v409_v4, %v408_v61 }
  0x89   : > { %v417_v11 = vadd.f32 %v416_v7, %v415_v0  ;;  %v411_v12 = vrot.slane %v410_v10, 1 }
  0x8b   : > { %v745_v48 = vpop.eup %744  ;;  %v418_v13 = vrot.slane %v417_v11, 1  ;;  %v412_v14 = vadd.f32 %v411_v12, %v410_v10 }
  0x8c   : > { %v371_v50 = vcombine.high %v745_v48, %v745_v48  ;;  %v373_v51 = vsel %vm348_vm1, %v745_v48, 0.0 }
  0x8d   : > { %v374_v52 = vrot.slane %v373_v51, 4  ;;  %v419_v17 = vadd.f32 %v418_v13, %v417_v11 }
  0x8e   : > { %v380_v54 = vsel %vm348_vm1, %v371_v50, 0.0 }
  0x8f   : > { %v375_v56 = vadd.f32 %v374_v52, %v373_v51  ;;  %v381_v57 = vrot.slane %v380_v54, 4 }
  0x91   : > { %v376_v59 = vrot.slane %v375_v56, 2  ;;  %v382_v60 = vadd.f32 %v381_v57, %v380_v54 }
  0x93   : > { %v377_v62 = vadd.f32 %v376_v59, %v375_v56  ;;  %v383_v63 = vrot.slane %v382_v60, 2 }
  0x95   : > { %v378_v2 = vrot.slane %v377_v62, 1  ;;  %v384_v3 = vadd.f32 %v383_v63, %v382_v60 }
  0x97   : > { %v379_v5 = vadd.f32 %v378_v2, %v377_v62  ;;  %v385_v6 = vrot.slane %v384_v3, 1 }
  0x99   : > { %v386_v8 = vadd.f32 %v385_v6, %v384_v3  ;;  %746 = vlog2.f32 %v379_v5 }
  0x9b   : > { %748 = vlog2.f32 %v386_v8 }
  0xa3   : > { %v747_v15 = vpop.eup %746 }
  0xa4   : > { %v388_v16 = vmul.f32 0.6931472, %v747_v15 }
  0xa5   : > { %v749_v18 = vpop.eup %748 }
  0xa6   : > { %v390_v19 = vmul.f32 0.6931472, %v749_v18  ;;  %v420_v20 = vsub.f32 %v388_v16, %v412_v14 }
  0xa8   : > { %v421_v22 = vsub.f32 %v390_v19, %v419_v17 }
  0xaa   : > { %v425_v23 = vcombine.low %v420_v20, %v421_v22 }
  0xac   : > { %v432_v24 = vrot.slane %v425_v23, %v1137_v9 }
  0xae   : > { %v439_v26 = vrot.slane %v432_v24, %v1137_v9 }
  0xb0   : > { %v441_v27 = vsel %vm1151_vm4, %v439_v26, 0.0 }
  0xb1   : > { %v442_v28 = vadd.f32 %v441_v27, %v422_v25 }
  0xb3   : > { %447 = vst.msk [vmem:[%s1124_s29] sm:$0x3] %vm1120_vm0, %v442_v28 }
  0xb4   : > { %851 = shalt.err (!%p848_p3)
}
  0xb5   : > { %s852_s23 = scalar_lea.hbm %s1211_s11, 32  ;;  %s856_s30 = scalar_lea.hbm %s1265_s2, 64 }
  0xb6   : > { %p853_p6 = scmp.ne.s32.totalorder %s1211_s11, %s852_s23  ;;  %p857_p8 = scmp.lt.u32.totalorder %s1211_s11, %s1265_s2 }
  0xb7   : > { %p858_p7 = scmp.lt.u32.totalorder %s856_s30, %s852_s23  ;;  %p860_p10 = scmp.lt.u32.totalorder %s852_s23, %s1211_s11 }
  0xb8   : > { %p854_p13 = pnand %p853_p6, %p1283_p0 }
  0xb9   : > { %p859_p4 = por %p858_p7, %p857_p8 }
  0xba   : > { %p855_p5 = pneg %p854_p13 }
  0xbb   : > { %p861_p12 = por %p860_p10, %p859_p4 }
  0xbd   : > { %p862_p1 = pnand %p861_p12, %p855_p5 }
  0xbf   : > { %865 = shalt.err (!%p862_p1)
}
  0xc0   : > { %671 = dma.vmem_to_hbm [thread:$0]  (%p1283_p0), %s1213_s4, 32, %s1211_s11, %s454_s19  }
  0xc1 PF: > { %s503_s22 = sand.u32 1, %s908_s12   ;;  %p1284_p2 = scmp.ne.s32.totalorder %s1272_s27, 0 }
  0xc2   : > { %p1285_p9 = scmp.ge.s32.totalorder %s928_s17, 2  ;;  %s504_s6 = scalar_lea.sflag [#allocation5], %s503_s22 }
  0xc4   : > { %p683_p11 = pnand %p1285_p9, %p1284_p2 }
  0xc6   : > { %899 = dma.done.wait (!%p683_p11), %s504_s6, 32  }
  0xc7   : > { %901 = vsyncadd (!%p683_p11), %s504_s6, 4294967264  ;;  %s513_s5 = scalar_lea.sflag [#allocation10], %s503_s22 }
  0xc8   : > { %903 = dma.done.wait (!%p683_p11), %s513_s5, 32  }
  0xc9   : > { %905 = vsyncadd (!%p683_p11), %s513_s5, 4294967264  ;;  %s26_s17 = sadd.s32 1, %s928_s17   ;;  %s1286_s12 = smov %s912_s13 }
  0xca   : > { %p23_p3 = scmp.ge.s32.totalorder %s26_s17, 4   ;;  %s1287_s13 = smov %s916_s14 }
  0xcb   : > { %s1288_s14 = smov %s1014_s26  ;;  %s1289_s15 = smov %s924_s16 }
  0xcc   : > { %s1290_s16 = smov %s1292_s20  ;;  %25 = sbr.rel (!%p23_p3) target bundleno = 10 (0xa), region = 107 }
  0xd3   :  { %518 = vsyncpa [#allocation4], 1 }
  0xd4   :  { %520 = vsyncpa [#allocation4 + $0x1], 1 }
  0xd5   :  { %521 = vsyncpa [#allocation7], 1 }
  0xd6   :  { %523 = vsyncpa [#allocation7 + $0x1], 1 }
  0xd7   :  { %524 = vsyncpa [#allocation5], 1 }
  0xd8   :  { %526 = vsyncpa [#allocation5 + $0x1], 1 }
  0xd9   :  { %527 = vsyncpa [#allocation10], 1 }
  0xda   :  { %529 = vsyncpa [#allocation10 + $0x1], 1 }

</bundles_post_ra>
